<compile_context>
chip_gen: v6e
topology: v6e:2x2x1
jax: 0.10.0
libtpu: 0.0.40
codegen_flags: <defaults>
</compile_context>

<pallas_src>
import functools

import jax
import jax.numpy as jnp
from jax.experimental import pallas as pl
from jax.experimental.pallas import tpu as pltpu


def _round_up(x, m):
    return ((x + m - 1) // m) * m


def _patch_embed_kernel(x_ref, w_ref, b_ref, o_ref):
    # x_ref: (TM, K) flattened-patch tile; w_ref: (K, N) weight (resident);
    # b_ref: (1, N) f32 bias (resident); o_ref: (TM, N) output tile.
    acc = jnp.dot(x_ref[...], w_ref[...], preferred_element_type=jnp.float32)
    o_ref[...] = (acc + b_ref[...]).astype(o_ref.dtype)


def patch_embed_matmul(x_flat, w_t, bias2d, *, tm=512, out_dtype=jnp.bfloat16):
    """x_flat: (M, K), w_t: (K, N), bias2d: (1, N) f32 -> (M, N) out_dtype."""
    M, K = x_flat.shape
    K2, N = w_t.shape
    assert K == K2, (K, K2)
    assert bias2d.shape == (1, N), bias2d.shape

    x_bytes = jnp.dtype(x_flat.dtype).itemsize
    w_bytes = jnp.dtype(w_t.dtype).itemsize
    o_bytes = jnp.dtype(out_dtype).itemsize

    # Row tile: big & 8-aligned; if one block would cover every row, split it in
    # two so the "parallel" M axis can occupy both TensorCores on v7x.
    tm_eff = min(tm, _round_up(M, 8))
    if M > 8 and tm_eff >= M:
        tm_eff = _round_up(pl.cdiv(M, 2), 8)

    def vmem_need(tm_):
        # Double-buffered x / out tiles; weight & bias are resident (constant
        # index_map) but the pipeline still allocates two buffers for them.
        return (2 * tm_ * K * x_bytes
                + 2 * K * N * w_bytes
                + 2 * N * 4
                + 2 * tm_ * N * o_bytes)

    try:
        vmem_cap = int(pltpu.get_tpu_info().vmem_capacity_bytes)
    except Exception:  # API drift / not on TPU: assume the smallest (v7x) VMEM.
        vmem_cap = 64 * 1024 * 1024
    budget = (vmem_cap * 9) // 10
    headroom = 2 * 1024 * 1024
    while tm_eff > 8 and vmem_need(tm_eff) + headroom > budget:
        tm_eff = _round_up(pl.cdiv(tm_eff, 2), 8)
    vmem_limit = int(min(max(vmem_need(tm_eff) + headroom, 16 * 1024 * 1024), budget))

    grid_m = pl.cdiv(M, tm_eff)

    cost = pl.CostEstimate(
        flops=2 * M * K * N,
        transcendentals=0,
        bytes_accessed=M * K * x_bytes + K * N * w_bytes + M * N * o_bytes + 4 * N,
    )

    return pl.pallas_call(
        _patch_embed_kernel,
        out_shape=jax.ShapeDtypeStruct((M, N), out_dtype),
        grid_spec=pltpu.PrefetchScalarGridSpec(
            num_scalar_prefetch=0,
            grid=(grid_m,),
            in_specs=[
                pl.BlockSpec((tm_eff, K), lambda i: (i, 0)),
                pl.BlockSpec((K, N), lambda i: (0, 0)),   # resident weight
                pl.BlockSpec((1, N), lambda i: (0, 0)),   # resident bias
            ],
            # Full (128-padded) hidden dim as output block -> lane-dense stores.
            out_specs=pl.BlockSpec((tm_eff, N), lambda i: (i, 0)),
        ),
        compiler_params=pltpu.CompilerParams(
            dimension_semantics=("parallel",),
            vmem_limit_bytes=vmem_limit,
            # Allow XLA to fuse the patchify transpose/cast producer into the
            # x_flat input DMA (avoids a full HBM round-trip of the (M, K) slab).
            allow_input_fusion=[True, False, False],
        ),
        cost_estimate=cost,
    )(x_flat, w_t, bias2d)


@functools.partial(
    jax.jit, static_argnames=("patch_size", "hidden_size", "tm", "out_dtype")
)
def _forward(pixel_values, w_kn, bias2d, *, patch_size, hidden_size, tm, out_dtype):
    B, C, H, W = pixel_values.shape
    ph, pw = patch_size
    gh, gw = H // ph, W // pw
    # Patchify: (B, C, GH, ph, GW, pw) -> (B, GH, GW, C, ph, pw) -> (M, K).
    # Under jit this producer can be fused into the pallas_call input DMA
    # (allow_input_fusion) instead of being written back to HBM.
    x = pixel_values.reshape(B, C, gh, ph, gw, pw)
    x = jnp.transpose(x, (0, 2, 4, 1, 3, 5))
    x_flat = x.reshape(B * gh * gw, C * ph * pw).astype(w_kn.dtype)

    out = patch_embed_matmul(x_flat, w_kn, bias2d, tm=tm, out_dtype=out_dtype)
    if out.shape[1] != hidden_size:          # drop the 128-pad columns
        out = out[:, :hidden_size]
    return out.reshape(B, gh * gw, hidden_size)


class ViTMAEPatchEmbeddingsPallas:
    """JAX/Pallas re-implementation of ViTMAEPatchEmbeddings.forward."""

    def __init__(self, image_size, patch_size, num_channels, hidden_size, key):
        image_size = (image_size, image_size) if isinstance(image_size, int) else tuple(image_size)
        patch_size = (patch_size, patch_size) if isinstance(patch_size, int) else tuple(patch_size)
        self.image_size = image_size
        self.patch_size = patch_size
        self.num_channels = num_channels
        self.hidden_size = hidden_size
        self.grid_size = (image_size[0] // patch_size[0], image_size[1] // patch_size[1])
        self.num_patches = self.grid_size[0] * self.grid_size[1]

        kw, kb = jax.random.split(key)
        fan_in = num_channels * patch_size[0] * patch_size[1]
        # Same parameter shapes as nn.Conv2d(C, hidden, kernel=P, stride=P).
        self.weight = (
            jax.random.normal(
                kw, (hidden_size, num_channels, patch_size[0], patch_size[1]), jnp.float32
            ) / jnp.sqrt(fan_in)
        )
        self.bias = jax.random.normal(kb, (hidden_size,), jnp.float32) * 0.02

        # Hoisted once: (hidden, C, P, P) -> (K, hidden), hidden padded up to a
        # multiple of 128 so output stores are lane-dense even for tiny hidden.
        k_dim = fan_in
        n_pad = _round_up(hidden_size, 128)
        w_kn = self.weight.reshape(hidden_size, k_dim).T               # (K, hidden)
        w_kn = jnp.pad(w_kn, ((0, 0), (0, n_pad - hidden_size)))
        self._w_kn_f32 = w_kn
        self._w_kn_bf16 = w_kn.astype(jnp.bfloat16)
        self._bias2d = jnp.pad(self.bias, (0, n_pad - hidden_size)).reshape(1, n_pad)

    def __call__(self, pixel_values, *, tm=512, out_dtype=jnp.bfloat16,
                 compute_dtype=jnp.bfloat16):
        B, C, H, W = pixel_values.shape
        if C != self.num_channels:
            raise ValueError(
                "Make sure that the channel dimension of the pixel values match "
                "with the one set in the configuration."
            )
        if H != self.image_size[0] or W != self.image_size[1]:
            raise ValueError(
                f"Input image size ({H}*{W}) doesn't match model "
                f"({self.image_size[0]}*{self.image_size[1]})."
            )
        if jnp.dtype(compute_dtype) == jnp.dtype(jnp.float32):
            w_kn = self._w_kn_f32
        else:
            w_kn = self._w_kn_bf16
        return _forward(
            pixel_values, w_kn, self._bias2d,
            patch_size=self.patch_size, hidden_size=self.hidden_size,
            tm=tm, out_dtype=out_dtype,
        )


def _reference(pixel_values, weight, bias, patch_size, compute_dtype=jnp.bfloat16):
    """Pure-JAX reference: same math as the kernel (rounded operands, f32 acc)."""
    B, C, H, W = pixel_values.shape
    ph, pw = patch_size
    gh, gw = H // ph, W // pw
    hidden = weight.shape[0]
    x = pixel_values.reshape(B, C, gh, ph, gw, pw)
    x = jnp.transpose(x, (0, 2, 4, 1, 3, 5)).reshape(B, gh * gw, C * ph * pw)
    x = x.astype(compute_dtype).astype(jnp.float32)
    w = weight.reshape(hidden, C * ph * pw).astype(compute_dtype).astype(jnp.float32)
    proj = jnp.einsum("bnk,hk->bnh", x, w, precision=jax.lax.Precision.HIGHEST)
    return proj + bias[None, None, :]


if __name__ == "__main__":
    key = jax.random.PRNGKey(0)
    k_params, k_pix, k2_params, k2_pix = jax.random.split(key, 4)

    # --- Test 1: small config (image 16, patch 4 -> 16 patches; C=4; hidden=32),
    #     default bf16 compute + bf16 output, hidden lane-padded 32 -> 128. ---
    B, C, IMG, P, HID = 2, 4, 16, 4, 32
    module = ViTMAEPatchEmbeddingsPallas(
        image_size=IMG, patch_size=P, num_channels=C, hidden_size=HID, key=k_params
    )
    pixel_values = jax.random.normal(k_pix, (B, C, IMG, IMG), jnp.float32)

    out = jax.block_until_ready(module(pixel_values))
    ref = _reference(pixel_values, module.weight, module.bias, module.patch_size)
    assert out.shape == (B, module.num_patches, HID), out.shape
    assert out.dtype == jnp.bfloat16, out.dtype
    assert jnp.allclose(out.astype(jnp.float32), ref, atol=2e-2, rtol=2e-2), \
        "mismatch vs reference (test 1)"

    # --- Test 2: ragged-M path (image 56, patch 4 -> 196 patches, B=2 -> M=392,
    #     two row blocks with a masked partial last block) with the explicit
    #     f32-operand / f32-output fallback. ---
    B2, IMG2 = 2, 56
    module2 = ViTMAEPatchEmbeddingsPallas(
        image_size=IMG2, patch_size=P, num_channels=C, hidden_size=HID, key=k2_params
    )
    pixel_values2 = jax.random.normal(k2_pix, (B2, C, IMG2, IMG2), jnp.float32)

    out2 = jax.block_until_ready(
        module2(pixel_values2, out_dtype=jnp.float32, compute_dtype=jnp.float32)
    )
    ref2 = _reference(pixel_values2, module2.weight, module2.bias,
                      module2.patch_size, compute_dtype=jnp.float32)
    assert out2.shape == (B2, module2.num_patches, HID), out2.shape
    assert out2.dtype == jnp.float32, out2.dtype
    assert jnp.allclose(out2, ref2, atol=1e-2, rtol=1e-2), \
        "mismatch vs reference (test 2)"

    print("KERNEL_OK")
</pallas_src>

<mosaic_0001>
module attributes {stable_mosaic.version = 11 : i64} {
  func.func @_patch_embed_kernel(%arg0: i32, %arg1: memref<16x64xbf16, #tpu.memory_space<vmem>>, %arg2: memref<64x128xbf16, #tpu.memory_space<vmem>>, %arg3: memref<1x128xf32, #tpu.memory_space<vmem>>, %arg4: memref<16x128xbf16, #tpu.memory_space<vmem>>) attributes {dimension_semantics = [#tpu.dimension_semantics<parallel>], iteration_bounds = array<i64: 2>, scalar_prefetch = 0 : i64, scratch_operands = 0 : i64, tpu.core_type = #tpu.core_type<tc>, window_params = [{transform_indices = @transform_0, window_bounds = array<i64: 16, 64>}, {pipeline_mode = #tpu.pipeline_mode<synchronous>, transform_indices = @transform_1, window_bounds = array<i64: 64, 128>}, {pipeline_mode = #tpu.pipeline_mode<synchronous>, transform_indices = @transform_2, window_bounds = array<i64: 1, 128>}, {transform_indices = @transform_3, window_bounds = array<i64: 16, 128>}]} {
    %c0 = arith.constant 0 : index
    %c0_0 = arith.constant 0 : index
    %0 = vector.load %arg1[%c0, %c0_0] : memref<16x64xbf16, #tpu.memory_space<vmem>>, vector<16x64xbf16>
    %c0_1 = arith.constant 0 : index
    %c0_2 = arith.constant 0 : index
    %1 = vector.load %arg2[%c0_1, %c0_2] : memref<64x128xbf16, #tpu.memory_space<vmem>>, vector<64x128xbf16>
    %cst = arith.constant dense<0.000000e+00> : vector<16x128xf32>
    %2 = tpu.matmul %0, %1, %cst {dimension_numbers = #tpu.dot_dimension_numbers<[1], [0], [0], [1], [0, 0, 1, 1], [], []>} : vector<16x64xbf16>, vector<64x128xbf16>, vector<16x128xf32> -> vector<16x128xf32>
    %c0_3 = arith.constant 0 : index
    %c0_4 = arith.constant 0 : index
    %3 = vector.load %arg3[%c0_3, %c0_4] : memref<1x128xf32, #tpu.memory_space<vmem>>, vector<1x128xf32>
    %4 = vector.broadcast %3 : vector<1x128xf32> to vector<16x128xf32>
    %5 = arith.addf %2, %4 : vector<16x128xf32>
    %6 = arith.truncf %5 : vector<16x128xf32> to vector<16x128xbf16>
    %c0_5 = arith.constant 0 : index
    %c0_6 = arith.constant 0 : index
    %7 = vector.load %arg4[%c0_5, %c0_6] : memref<16x128xbf16, #tpu.memory_space<vmem>>, vector<16x128xbf16>
    tpu.vector_store %arg4[%c0_5, %c0_6], %6 {strides = array<i32>} : memref<16x128xbf16, #tpu.memory_space<vmem>>, vector<16x128xbf16>,
    return
  }
  func.func @transform_0(%arg0: i32) -> (i32, i32) {
    %c0_i32 = arith.constant 0 : i32
    %c0_i32_0 = arith.constant 0 : i32
    return %arg0, %c0_i32 : i32, i32
  }
  func.func @transform_1(%arg0: i32) -> (i32, i32) {
    %c0_i32 = arith.constant 0 : i32
    %c0_i32_0 = arith.constant 0 : i32
    %c0_i32_1 = arith.constant 0 : i32
    return %c0_i32, %c0_i32_0 : i32, i32
  }
  func.func @transform_2(%arg0: i32) -> (i32, i32) {
    %c0_i32 = arith.constant 0 : i32
    %c0_i32_0 = arith.constant 0 : i32
    %c0_i32_1 = arith.constant 0 : i32
    return %c0_i32, %c0_i32_0 : i32, i32
  }
  func.func @transform_3(%arg0: i32) -> (i32, i32) {
    %c0_i32 = arith.constant 0 : i32
    %c0_i32_0 = arith.constant 0 : i32
    return %arg0, %c0_i32 : i32, i32
  }
}

</mosaic_0001>

<bundles_post_ra>
// kernel: _forward.1
= control target key start
LH: loop header
LB: loop body
LE: loop exit
PB: predicated region body
PF: predicated region fallthrough
CT: control target
= control target key end

     0   :  { %8 = vsyncpa [#allocation3], 0  ;;  %s647_s0 = inlined_call_operand.vmem [shape: bf16[32,64], index: 0, kind: input, shape index: {}]   ;;  %s648_s1 = inlined_call_operand.vmem [shape: bf16[64,128], index: 1, kind: input, shape index: {}]   ;;  %s649_s2 = inlined_call_operand.vmem [shape: f32[1,128], index: 2, kind: input, shape index: {}]   ;;  %s650_s3 = inlined_call_operand.hbm [shape: bf16[32,128], index: 3, kind: output, shape index: {}]  }
   0x1   :  { %10 = vsyncpa [#allocation3 + $0x1], 0  ;;  %s531_s12 = smov 0   ;;  %s533_s13 = smov 0  }
   0x2   :  { %s535_s14 = smov 0   ;;  %s537_s15 = smov 0  }
   0x3 LB: > { %s552_s16 = sadd.s32 4294967295, %s504_s15   ;;  %s350_s17 = sadd.s32 4294967294, %s504_s15   ;;  %s504_s15 = sphi %s537_s15, %s656_s15   ;;  %s500_s14 = sphi %s535_s14, %s655_s14   ;;  %s496_s13 = sphi %s533_s13, %s654_s13   ;;  %s492_s12 = sphi %s531_s12, %s653_s12  }
   0x4   : > { %s556_s18 = sadd.s32 1, %s504_s15   ;;  %s91_s19 = sadd.s32 1, %s500_s14 }
   0x5   : > { %s88_s20 = ssub.s32 %s504_s15, %s556_s18  ;;  %p101_p0 = scmp.ne.s32.totalorder %s500_s14, %s496_s13 }
   0x6   : > { %p89_p1 = scmp.eq.s32.totalorder %s88_s20, 0  ;;  %p102_p2 = scmp.eq.s32.totalorder %s552_s16, 1 }
   0x7   : > { %p107_p3 = scmp.ne.s32.totalorder %s496_s13, %s492_s12  ;;  %p108_p4 = scmp.eq.s32.totalorder %s350_s17, 1 }
   0x8   : > { %s567_s21 = scalar_select %p89_p1, %s500_s14, %s91_s19  }
   0x9   : > { %p569_p5 = por %p102_p2, %p101_p0  ;;  %p573_p6 = por %p108_p4, %p107_p3 }
   0xa   : > { %p353_p7 = scmp.ge.s32.totalorder %s504_s15, 1  ;;  %p141_p8 = scmp.lt.s32.totalorder %s504_s15, 3 }
   0xc   : > { %p142_p9 = pnand %p353_p7, %p141_p8 }
   0xd   : > { %s355_s28 = sshll.u32 (!%p142_p9), %s552_s16, 1  ;;  %s162_s10 = sand.u32 (!%p142_p9), 1, %s496_s13  }
   0xe   : > { %145 = sbr.rel (%p142_p9) target bundleno = 251 (0xfb), region = 32  ;;  %p166_p10 = scmp.lt.s32.totalorder (!%p142_p9), %s355_s28, 3 }
   0xf   : > { %s354_s11 = sshll.u32 (!%p142_p9), %s162_s10, 3  ;;  %s373_s25 = sshll.u32 (!%p142_p9), %s552_s16, 7 }
  0x10   : > { %s164_s20 = scalar_lea.vmem (!%p142_p9), [#allocation2], %s354_s11  ;;  %s607_s29 = scalar_lea.sflag (!%p142_p9), [#allocation3], %s162_s10 }
  0x11   : > { %s288_s24 = sshll.u32 (!%p142_p9), %s164_s20, 4  ;;  %s508_s16 = smov (!%p142_p9), [#allocation2]   ;;  %s600_s24 = int_to_ptr.vmem [resolvable:$true] %s288_s24 }
  0x12   : > { %s444_s30 = scalar_lea.vmem (!%p142_p9), %s600_s24, 128 }
  0x13   : > { %v439_v0 = vld [vmem:[%s648_s1 + $0x18] sm:$0xff]   ;;  %v506_v1 = vmov 0.0   ;;  %v440_v2 = vld [vmem:[%s648_s1 + $0x10] sm:$0xff]   ;;  %vm507_vm0 = vmmov 0   ;;  %s658_s28 = smov (!%p166_p10, %s355_s28), 3  ;;  %v441_v3 = vld [vmem:[%s648_s1 + $0x8] sm:$0xff]   ;;  %p445_p11 = scmp.ne.s32.totalorder %s600_s24, %s444_s30 }
  0x14   : > { %384 = vmatprep.subr.bf16.mxu0 %v506_v1  ;;  %392 = vmatprep.mubr.msk.bf16.mxu0 %vm507_vm0, %v506_v1  ;;  %s356_s4 = sshll.u32 %s658_s28, 2  ;;  %v442_v4 = vld [vmem:[%s648_s1] sm:$0xff]   ;;  %vm219_vm1 = vcmask 523264   ;;  %s605_s28 = scalar_lea.hbm %s650_s3, %s373_s25 }
  0x15   : > { %385 = vmatpush3.bf16.msra.mxu0 %v439_v0  ;;  %s169_s7 = scalar_lea.vmem %s647_s0, %s356_s4  ;;  %v357_v7 = vld [vmem:[%s649_s2] ss:$0 sm:$0xff]  ;;  %p446_p12 = pnand %p445_p11, %p569_p5 }
  0x16   : > { %386 = vmatprep.subr.bf16.mxu0 %v506_v1  ;;  %v443_v5 = vld [vmem:[%s169_s7] sm:$0xff]   ;;  %s448_s4 = sshll.u32 %s508_s16, 4  ;;  %s449_s4 = int_to_ptr.vmem [resolvable:$false] %s448_s4 }
  0x17   : > { %p447_p13 = pneg %p446_p12  ;;  %s450_s5 = scalar_lea.vmem %s449_s4, 256 }
  0x18   : > { %p451_p0 = scmp.lt.s32.totalorder %s600_s24, %s449_s4  ;;  %p452_p1 = scmp.lt.s32.totalorder %s450_s5, %s444_s30 }
  0x19   : > { %387 = vmatpush3.bf16.msra.mxu0 %v440_v2 }
  0x1a   : > { %388 = vmatprep.subr.bf16.mxu0 %v506_v1  ;;  %p453_p2 = por %p452_p1, %p451_p0 }
  0x1c   : > { %p454_p3 = pnand %p453_p2, %p447_p13 }
  0x1d   : > { %389 = vmatpush3.bf16.msra.mxu0 %v441_v3 }
  0x1e   : > { %390 = vmatprep.subr.bf16.mxu0 %v506_v1 }
  0x21   : > { %391 = vmatpush3.bf16.msra.mxu0 %v442_v4 }
  0x24   : > { %393 = vmatmul.mubr.msk.bf16.vlgmr.msra.gmra.mxu0 %vm219_vm1, %v443_v5 }
  0xe4   : > { %v257_v6 = vpop.f32.mrf.mxu0 }
  0xe5   : > { %v258_v10 = vadd.f32 %v357_v7, %v257_v6 }
  0xe6   : > { %v394_v8 = vpop.f32.mrf.mxu0 }
  0xe8   : > { %v260_v9 = vpop.f32.mrf.mxu0 }
  0xe9   : > { %v261_v11 = vadd.f32 %v357_v7, %v260_v9 }
  0xea   : > { %v395_v12 = vpop.f32.mrf.mxu0 }
  0xeb   : > { %v377_v13 = vpack.c.bf16 %v261_v11, %v258_v10 }
  0xed   : > { %378 = vst [vmem:[%s164_s20] sm:$0xff] %v377_v13  }
  0xee   : > { %457 = shalt.err (!%p454_p3)
}
  0xef   : > { %s458_s6 = scalar_lea.hbm %s605_s28, 128  ;;  %s462_s9 = scalar_lea.hbm %s650_s3, 256 }
  0xf0   : > { %p459_p4 = scmp.ne.s32.totalorder %s605_s28, %s458_s6  ;;  %p463_p9 = scmp.lt.s32.totalorder %s605_s28, %s650_s3 }
  0xf1   : > { %p464_p10 = scmp.lt.s32.totalorder %s462_s9, %s458_s6 }
  0xf2   : > { %p460_p7 = pnand %p459_p4, %p569_p5 }
  0xf3   : > { %p465_p11 = por %p464_p10, %p463_p9 }
  0xf4   : > { %p461_p8 = pneg %p460_p7 }
  0xf6   : > { %p466_p12 = pnand %p465_p11, %p461_p8 }
  0xf8   : > { %469 = shalt.err (!%p466_p12)
}
  0xf9   : > { %s509_s17 = smov 64   ;;  %s510_s19 = smov 4  }
  0xfa   : > { %396 = dma.vmem_to_hbm [thread:$0]  (%p569_p5), %s600_s24, 128, %s605_s28, %s607_s29, %s509_s17, %s509_s17, %s510_s19  }
  0xfb PF: > { %p402_p13 = scmp.ge.s32.totalorder %s504_s15, 2  ;;  %s303_s20 = sand.u32 1, %s492_s12  }
  0xfc   : > { %s304_s25 = scalar_lea.sflag [#allocation3], %s303_s20 }
  0xfd   : > { %p399_p0 = pnand %p402_p13, %p573_p6 }
  0xff   : > { %p400_p1 = pneg %p399_p0 }
 0x101   : > { %487 = dma.done.wait (%p400_p1), %s304_s25, 128  }
 0x102   : > { %489 = vsyncadd (%p400_p1), %s304_s25, 4294967168  ;;  %p13_p2 = scmp.ge.s32.totalorder %s556_s18, 4   ;;  %s653_s12 = smov %s496_s13 }
 0x103   : > { %s654_s13 = smov %s500_s14  ;;  %s655_s14 = smov %s567_s21 }
 0x104   : > { %s656_s15 = smov %s556_s18  ;;  %15 = sbr.rel (!%p13_p2) target bundleno = 3 (0x3), region = 67 }
 0x109   :  { %309 = vsyncpa [#allocation3], 1 }
 0x10a   :  { %311 = vsyncpa [#allocation3 + $0x1], 1 }

</bundles_post_ra>
